<compile_context>
chip_gen: v5e
topology: v5e:2x2
jax: 0.10.0
libtpu: 0.0.40
codegen_flags: <defaults>
</compile_context>

<pallas_src>
import jax
import jax.numpy as jnp
from jax import lax
from jax.experimental import pallas as pl
from jax.experimental.pallas import tpu as pltpu


EPS = 1e-5

# Budget for the double-buffered (input + output + f32 temps) tiles of one step.
_TILE_BUDGET_BYTES = 2 * 1024 * 1024
_MAX_TILE_HW = 2048            # lane-dense cap; bigger tiles buy ~nothing
_BATCH_PACK_TARGET = 256 * 1024  # pack batches until a block reaches ~this size


def _biasfree_ln_kernel(x_ref, w_ref, o_ref):
    # x_ref / o_ref: (Bt, C, TILE_HW) -- channels on sublanes, spatial on lanes
    # w_ref:         (1,  C, 1)       -- broadcast along batch and lanes
    x = x_ref[...].astype(jnp.float32)
    inv_c = jnp.float32(1.0 / x.shape[1])
    s1 = jnp.sum(x, axis=1, keepdims=True) * inv_c          # E[x]
    s2 = jnp.sum(x * x, axis=1, keepdims=True) * inv_c      # E[x^2]
    var = jnp.maximum(s2 - s1 * s1, 0.0)                    # unbiased=False
    # NOTE: BiasFree divides x (not x - mu) by sqrt(var + eps), matching PyTorch.
    w = w_ref[...].astype(jnp.float32)
    o_ref[...] = (x * lax.rsqrt(var + EPS) * w).astype(o_ref.dtype)


def _pick_tiles(batch, c, hw, itemsize):
    """Choose (Bt, TILE_HW): lane-dense, modest footprint, >=4 steps if possible."""
    # Bytes per lane column per batch row: double-buffered in/out + ~3 f32 temps.
    per_col = c * (4 * itemsize + 3 * 4)
    budget_cols = max(128, (_TILE_BUDGET_BYTES // per_col) // 128 * 128)

    if hw <= 128:
        thw = hw                                       # full dim -> always legal
    else:
        thw = min(_MAX_TILE_HW, budget_cols, max(128, (hw // 128) * 128))
    n_hw = -(-hw // thw)

    # Batch-block small spatial extents so per-step DMAs stay large, but keep
    # >=4 total grid steps (>=2 per v7x TensorCore) whenever possible.
    bt = 1
    tile_bytes = c * thw * itemsize
    while (bt < batch
           and tile_bytes * (bt * 2) <= _BATCH_PACK_TARGET
           and (-(-batch // (bt * 2))) * n_hw >= 4):
        bt *= 2
    return min(bt, batch), thw


@jax.jit
def biasfree_layernorm_nchw(x, weight):
    """y = to_4d(BiasFree_LayerNorm(to_3d(x))) for NCHW x, weight of shape (C,)."""
    B, C, H, W = x.shape
    HW = H * W
    itemsize = jnp.dtype(x.dtype).itemsize

    xr = x.reshape(B, C, HW)                           # merge contiguous minor dims
    w3 = weight.reshape(1, C, 1)

    bt, thw = _pick_tiles(B, C, HW, itemsize)
    n_b = pl.cdiv(B, bt)
    n_hw = pl.cdiv(HW, thw)

    # Explicit scoped-VMEM limit: double-buffered in/out blocks + f32 temps.
    blk = bt * C * thw
    est = 2 * 2 * blk * itemsize + 3 * blk * 4 + (2 << 20)
    vmem_bytes = int(min(max(est, 16 << 20), 32 << 20))

    out = pl.pallas_call(
        _biasfree_ln_kernel,
        out_shape=jax.ShapeDtypeStruct((B, C, HW), x.dtype),
        grid_spec=pltpu.PrefetchScalarGridSpec(
            num_scalar_prefetch=0,
            grid=(n_b, n_hw),
            in_specs=[
                pl.BlockSpec((bt, C, thw), lambda b, j: (b, 0, j)),
                pl.BlockSpec((1, C, 1), lambda b, j: (0, 0, 0)),
            ],
            out_specs=pl.BlockSpec((bt, C, thw), lambda b, j: (b, 0, j)),
        ),
        compiler_params=pltpu.CompilerParams(
            dimension_semantics=("parallel", "parallel"),
            vmem_limit_bytes=vmem_bytes,
        ),
    )(xr, w3)

    return out.reshape(B, C, H, W)


def _reference(x, weight):
    # Pure-JAX reference mirroring to_3d -> BiasFree_LayerNorm -> to_4d.
    B, C, H, W = x.shape
    x3 = jnp.transpose(x, (0, 2, 3, 1)).reshape(B, H * W, C).astype(jnp.float32)
    var = jnp.var(x3, axis=-1, keepdims=True)          # unbiased=False
    y = x3 / jnp.sqrt(var + EPS) * weight.astype(jnp.float32)
    return jnp.transpose(y.reshape(B, H, W, C), (0, 3, 1, 2)).astype(x.dtype)


if __name__ == "__main__":
    key = jax.random.PRNGKey(0)
    k1, k2, k3, k4 = jax.random.split(key, 4)

    # Case 1: small, evenly tiled spatial extent.
    B, C, H, W = 2, 32, 16, 16
    x = jax.random.normal(k1, (B, C, H, W), dtype=jnp.float32)
    weight = jnp.ones((C,), dtype=jnp.float32)         # module init: ones(dim)

    out = biasfree_layernorm_nchw(x, weight)
    jax.block_until_ready(out)
    ref = _reference(x, weight)
    assert out.shape == (B, C, H, W)
    assert jnp.max(jnp.abs(out - ref)) < 5e-5

    # Case 2: H*W not a multiple of 128 (exercises cdiv / ragged last tile).
    B2, C2, H2, W2 = 1, 48, 20, 20
    x2 = jax.random.normal(k2, (B2, C2, H2, W2), dtype=jnp.float32)
    w2 = jax.random.normal(k3, (C2,), dtype=jnp.float32)

    out2 = biasfree_layernorm_nchw(x2, w2)
    jax.block_until_ready(out2)
    ref2 = _reference(x2, w2)
    assert out2.shape == (B2, C2, H2, W2)
    assert jnp.max(jnp.abs(out2 - ref2)) < 5e-5

    # Case 3: many small images -> exercises batch-blocking (Bt > 1).
    B3, C3, H3, W3 = 8, 16, 8, 8
    x3 = jax.random.normal(k4, (B3, C3, H3, W3), dtype=jnp.float32)
    w3 = jnp.ones((C3,), dtype=jnp.float32)

    out3 = biasfree_layernorm_nchw(x3, w3)
    jax.block_until_ready(out3)
    ref3 = _reference(x3, w3)
    assert out3.shape == (B3, C3, H3, W3)
    assert jnp.max(jnp.abs(out3 - ref3)) < 5e-5

    print("KERNEL_OK")
</pallas_src>

<mosaic_0001>
module attributes {stable_mosaic.version = 11 : i64} {
  func.func @_biasfree_ln_kernel(%arg0: i32, %arg1: i32, %arg2: memref<1x32x256xf32, #tpu.memory_space<vmem>>, %arg3: memref<1x32x1xf32, #tpu.memory_space<vmem>>, %arg4: memref<1x32x256xf32, #tpu.memory_space<vmem>>) attributes {dimension_semantics = [#tpu.dimension_semantics<parallel>, #tpu.dimension_semantics<parallel>], iteration_bounds = array<i64: 2, 1>, scalar_prefetch = 0 : i64, scratch_operands = 0 : i64, tpu.core_type = #tpu.core_type<tc>, window_params = [{transform_indices = @transform_0, window_bounds = array<i64: 1, 32, 256>}, {pipeline_mode = #tpu.pipeline_mode<synchronous>, transform_indices = @transform_1, window_bounds = array<i64: 1, 32, 1>}, {transform_indices = @transform_2, window_bounds = array<i64: 1, 32, 256>}]} {
    %c0 = arith.constant 0 : index
    %c0_0 = arith.constant 0 : index
    %c0_1 = arith.constant 0 : index
    %0 = vector.load %arg2[%c0, %c0_0, %c0_1] : memref<1x32x256xf32, #tpu.memory_space<vmem>>, vector<1x32x256xf32>
    %cst = arith.constant dense<0.000000e+00> : vector<1x256xf32>
    %1 = vector.multi_reduction <add>, %0, %cst [1] : vector<1x32x256xf32> to vector<1x256xf32>
    %2 = vector.shape_cast %1 : vector<1x256xf32> to vector<1x1x256xf32>
    %cst_2 = arith.constant 3.125000e-02 : f32
    %3 = vector.broadcast %cst_2 : f32 to vector<1x1x256xf32>
    %4 = arith.mulf %2, %3 : vector<1x1x256xf32>
    %5 = arith.mulf %0, %0 : vector<1x32x256xf32>
    %cst_3 = arith.constant dense<0.000000e+00> : vector<1x256xf32>
    %6 = vector.multi_reduction <add>, %5, %cst_3 [1] : vector<1x32x256xf32> to vector<1x256xf32>
    %7 = vector.shape_cast %6 : vector<1x256xf32> to vector<1x1x256xf32>
    %cst_4 = arith.constant 3.125000e-02 : f32
    %8 = vector.broadcast %cst_4 : f32 to vector<1x1x256xf32>
    %9 = arith.mulf %7, %8 : vector<1x1x256xf32>
    %10 = arith.mulf %4, %4 : vector<1x1x256xf32>
    %11 = arith.subf %9, %10 : vector<1x1x256xf32>
    %cst_5 = arith.constant 0.000000e+00 : f32
    %12 = vector.broadcast %cst_5 : f32 to vector<1x1x256xf32>
    %13 = arith.maximumf %11, %12 : vector<1x1x256xf32>
    %c0_6 = arith.constant 0 : index
    %c0_7 = arith.constant 0 : index
    %c0_8 = arith.constant 0 : index
    %14 = vector.load %arg3[%c0_6, %c0_7, %c0_8] : memref<1x32x1xf32, #tpu.memory_space<vmem>>, vector<1x32x1xf32>
    %cst_9 = arith.constant 9.99999974E-6 : f32
    %15 = vector.broadcast %cst_9 : f32 to vector<1x1x256xf32>
    %16 = arith.addf %13, %15 : vector<1x1x256xf32>
    %17 = math.rsqrt %16 : vector<1x1x256xf32>
    %18 = vector.broadcast %17 : vector<1x1x256xf32> to vector<1x32x256xf32>
    %19 = arith.mulf %0, %18 : vector<1x32x256xf32>
    %20 = vector.broadcast %14 : vector<1x32x1xf32> to vector<1x32x256xf32>
    %21 = arith.mulf %19, %20 : vector<1x32x256xf32>
    %c0_10 = arith.constant 0 : index
    %c0_11 = arith.constant 0 : index
    %c0_12 = arith.constant 0 : index
    %22 = vector.load %arg4[%c0_10, %c0_11, %c0_12] : memref<1x32x256xf32, #tpu.memory_space<vmem>>, vector<1x32x256xf32>
    tpu.vector_store %arg4[%c0_10, %c0_11, %c0_12], %21 {strides = array<i32>} : memref<1x32x256xf32, #tpu.memory_space<vmem>>, vector<1x32x256xf32>,
    return
  }
  func.func @transform_0(%arg0: i32, %arg1: i32) -> (i32, i32, i32) {
    %c0_i32 = arith.constant 0 : i32
    %c0_i32_0 = arith.constant 0 : i32
    return %arg0, %c0_i32, %arg1 : i32, i32, i32
  }
  func.func @transform_1(%arg0: i32, %arg1: i32) -> (i32, i32, i32) {
    %c0_i32 = arith.constant 0 : i32
    %c0_i32_0 = arith.constant 0 : i32
    %c0_i32_1 = arith.constant 0 : i32
    %c0_i32_2 = arith.constant 0 : i32
    return %c0_i32, %c0_i32_0, %c0_i32_1 : i32, i32, i32
  }
  func.func @transform_2(%arg0: i32, %arg1: i32) -> (i32, i32, i32) {
    %c0_i32 = arith.constant 0 : i32
    %c0_i32_0 = arith.constant 0 : i32
    return %arg0, %c0_i32, %arg1 : i32, i32, i32
  }
}

</mosaic_0001>

<bundles_post_ra>
// kernel: biasfree_layernorm_nchw.1
= control target key start
LH: loop header
LB: loop body
LE: loop exit
PB: predicated region body
PF: predicated region fallthrough
CT: control target
= control target key end

     0   :  { %s486_s9 = smov 0   ;;  %s488_s10 = smov 0   ;;  %s586_s0 = inlined_call_operand.vmem [shape: f32[2,32,256], index: 0, kind: input, shape index: {}]   ;;  %s587_s1 = inlined_call_operand.vmem [shape: f32[1,32,1], index: 1, kind: input, shape index: {}]   ;;  %s588_s2 = inlined_call_operand.vmem [shape: f32[2,32,256], index: 2, kind: output, shape index: {}]  }
   0x1   :  { %s490_s11 = smov 0  }
   0x2 LB: > { %s24_s12 = sadd.s32 1, %s464_s10  ;;  %p406_p0 = scmp.ge.s32.totalorder %s468_s11, 1  ;;  %s468_s11 = sphi %s490_s11, %s12_s11   ;;  %s464_s10 = sphi %s488_s10, %s590_s10   ;;  %s460_s9 = sphi %s486_s9, %s589_s9  }
   0x3   : > { %p26_p1 = scmp.ge.s32.totalorder %s24_s12, 2  ;;  %p133_p2 = scmp.lt.s32.totalorder %s468_s11, 3 }
   0x5   : > { %s592_s12 = smov (%p26_p1, %s24_s12), 0  ;;  %p134_p3 = pnand %p406_p0, %p133_p2 }
   0x6   : > { %p164_p4 = scmp.lt.s32.totalorder (!%p134_p3), %s460_s9, 1 }
   0x7   : > { %137 = sbr.rel (%p134_p3) target bundleno = 143 (0x8f), region = 28 }
   0xc   : > { %v247_v0 = vld [vmem:[%s587_s1 + $0x10] sm:$0xff]  ;;  %v245_v1 = vld [vmem:[%s587_s1] sm:$0xff]  ;;  %v470_v2 = vmov 0   ;;  %v248_v3 = vld [vmem:[%s587_s1 + $0x18] sm:$0xff]  ;;  %s594_s9 = smov (!%p164_p4, %s460_s9), 1 }
   0xd   : > { %441 = vset.pattern.permute.xlu1 %v470_v2  ;;  %440 = vset.pattern.permute.xlu0 %v470_v2  ;;  %v246_v4 = vld [vmem:[%s587_s1 + $0x8] sm:$0xff]  ;;  %s413_s21 = sshll.u32 %s594_s9, 6 }
   0xe   : > { %291 = vperm.xlu1 %441, %v247_v0   ;;  %281 = vperm.xlu0 %440, %v245_v1   ;;  %s171_s24 = scalar_lea.vmem %s586_s0, %s413_s21  ;;  %s181_s27 = scalar_lea.vmem %s588_s2, %s413_s21 }
   0xf   : > { %v524_v5 = vld [vmem:[%s171_s24] sm:$0xff]  ;;  %v526_v6 = vld [vmem:[%s171_s24 + $0x8] sm:$0xff]  ;;  %v528_v7 = vld [vmem:[%s171_s24 + $0x10] sm:$0xff] }
  0x10   : > { %v530_v8 = vld [vmem:[%s171_s24 + $0x18] sm:$0xff]  ;;  %v191_v9 = vadd.f32 %v528_v7, %v524_v5  ;;  %v211_v10 = vmul.f32 %v524_v5, %v524_v5  ;;  %v212_v11 = vmul.f32 %v526_v6, %v526_v6  ;;  %v213_v12 = vmul.f32 %v528_v7, %v528_v7  ;;  %v540_v13 = vld [vmem:[%s171_s24 + $0x20] sm:$0xff]  ;;  %v542_v14 = vld [vmem:[%s171_s24 + $0x28] sm:$0xff] }
  0x11   : > { %v200_v15 = vadd.f32 %v530_v8, %v526_v6  ;;  %v214_v16 = vmul.f32 %v530_v8, %v530_v8  ;;  %v215_v18 = vmul.f32 %v540_v13, %v540_v13  ;;  %v216_v19 = vmul.f32 %v542_v14, %v542_v14  ;;  %v553_v21 = vld [vmem:[%s171_s24 + $0x30] sm:$0xff]  ;;  %v555_v22 = vld [vmem:[%s171_s24 + $0x38] sm:$0xff] }
  0x12   : > { %v192_v17 = vadd.f32 %v191_v9, %v540_v13  ;;  %v219_v20 = vadd.f32 %v213_v12, %v211_v10  ;;  %v217_v26 = vmul.f32 %v553_v21, %v553_v21  ;;  %v218_v27 = vmul.f32 %v555_v22, %v555_v22 }
  0x13   : > { %v201_v23 = vadd.f32 %v200_v15, %v542_v14  ;;  %v228_v24 = vadd.f32 %v214_v16, %v212_v11 }
  0x14   : > { %v193_v25 = vadd.f32 %v192_v17, %v553_v21  ;;  %v220_v28 = vadd.f32 %v219_v20, %v215_v18 }
  0x15   : > { %v202_v29 = vadd.f32 %v201_v23, %v555_v22  ;;  %v229_v30 = vadd.f32 %v228_v24, %v216_v19 }
  0x16   : > { %296 = vperm.xlu1 %441, %v248_v3   ;;  %286 = vperm.xlu0 %440, %v246_v4   ;;  %v194_v31 = vrot.slane %v193_v25, 4  ;;  %v221_v32 = vadd.f32 %v220_v28, %v217_v26 }
  0x17   : > { %v203_v33 = vrot.slane %v202_v29, 4  ;;  %v230_v34 = vadd.f32 %v229_v30, %v218_v27 }
  0x18   : > { %v195_v35 = vadd.f32 %v194_v31, %v193_v25  ;;  %v222_v36 = vrot.slane %v221_v32, 4 }
  0x19   : > { %v204_v37 = vadd.f32 %v203_v33, %v202_v29  ;;  %v231_v38 = vrot.slane %v230_v34, 4 }
  0x1a   : > { %v196_v39 = vrot.slane %v195_v35, 2  ;;  %v223_v40 = vadd.f32 %v222_v36, %v221_v32 }
  0x1b   : > { %v205_v41 = vrot.slane %v204_v37, 2  ;;  %v232_v42 = vadd.f32 %v231_v38, %v230_v34 }
  0x1c   : > { %v197_v43 = vadd.f32 %v196_v39, %v195_v35  ;;  %v224_v44 = vrot.slane %v223_v40, 2 }
  0x1d   : > { %v206_v45 = vadd.f32 %v205_v41, %v204_v37  ;;  %v233_v46 = vrot.slane %v232_v42, 2 }
  0x1e   : > { %v198_v47 = vrot.slane %v197_v43, 1  ;;  %v225_v48 = vadd.f32 %v224_v44, %v223_v40 }
  0x1f   : > { %v207_v49 = vrot.slane %v206_v45, 1  ;;  %v234_v50 = vadd.f32 %v233_v46, %v232_v42 }
  0x20   : > { %v199_v51 = vadd.f32 %v198_v47, %v197_v43  ;;  %v226_v52 = vrot.slane %v225_v48, 1 }
  0x21   : > { %v208_v53 = vadd.f32 %v207_v49, %v206_v45  ;;  %v235_v54 = vrot.slane %v234_v50, 1 }
  0x22   : > { %v209_v55 = vmul.f32 0.03125, %v199_v51  ;;  %v227_v56 = vadd.f32 %v226_v52, %v225_v48 }
  0x23   : > { %v210_v57 = vmul.f32 0.03125, %v208_v53  ;;  %v236_v58 = vadd.f32 %v235_v54, %v234_v50 }
  0x24   : > { %v237_v59 = vmul.f32 0.03125, %v227_v56  ;;  %v239_v60 = vmul.f32 %v209_v55, %v209_v55 }
  0x25   : > { %v238_v61 = vmul.f32 0.03125, %v236_v58  ;;  %v240_v62 = vmul.f32 %v210_v57, %v210_v57 }
  0x26   : > { %v241_v63 = vsub.f32 %v237_v59, %v239_v60 }
  0x27   : > { %v242_v0 = vsub.f32 %v238_v61, %v240_v62 }
  0x28   : > { %v243_v1 = vmax.f32 %v241_v63, 0.0 }
  0x29   : > { %v244_v2 = vmax.f32 %v242_v0, 0.0 }
  0x2a   : > { %v249_v3 = vadd.f32 1e-05, %v243_v1 }
  0x2b   : > { %v250_v4 = vadd.f32 1e-05, %v244_v2 }
  0x2c   : > { %442 = vrsqrt.f32 %v249_v3  ;;  %vm257_vm0 = vweird.f32 %v249_v3 }
  0x2d   : > { %444 = vrsqrt.f32 %v250_v4  ;;  %vm267_vm2 = vweird.f32 %v250_v4 }
  0x32   : > { %v443_v9 = vpop.eup %442 }
  0x33   : > { %v445_v10 = vpop.eup %444  ;;  %v252_v11 = vmul.f32 %v443_v9, %v249_v3  ;;  %vm258_vm1 = vweird.f32 %v443_v9 }
  0x34   : > { %v262_v12 = vmul.f32 %v445_v10, %v250_v4  ;;  %vm268_vm3 = vweird.f32 %v445_v10  ;;  %vm259_vm4 = vmor %vm257_vm0, %vm258_vm1 }
  0x35   : > { %v253_v15 = vmul.f32 %v443_v9, %v252_v11  ;;  %vm269_vm5 = vmor %vm267_vm2, %vm268_vm3 }
  0x36   : > { %v263_v16 = vmul.f32 %v445_v10, %v262_v12 }
  0x37   : > { %v254_v17 = vmul.f32 0.5, %v253_v15 }
  0x38   : > { %v264_v18 = vmul.f32 0.5, %v263_v16 }
  0x39   : > { %v255_v19 = vsub.f32 1.5, %v254_v17 }
  0x3a   : > { %v265_v20 = vsub.f32 1.5, %v264_v18 }
  0x3b   : > { %v256_v23 = vmul.f32 %v443_v9, %v255_v19 }
  0x3c   : > { %v266_v24 = vmul.f32 %v445_v10, %v265_v20 }
  0x3d   : > { %v260_v25 = vsel %vm259_vm4, %v443_v9, %v256_v23 }
  0x3e   : > { %v270_v26 = vsel %vm269_vm5, %v445_v10, %v266_v24  ;;  %v275_v27 = vmul.f32 %v260_v25, %v540_v13  ;;  %v271_v29 = vmul.f32 %v260_v25, %v524_v5  ;;  %v277_v13 = vmul.f32 %v260_v25, %v553_v21 }
  0x3f   : > { %v276_v28 = vmul.f32 %v270_v26, %v542_v14  ;;  %v272_v30 = vmul.f32 %v270_v26, %v526_v6  ;;  %v278_v5 = vmul.f32 %v270_v26, %v555_v22  ;;  %v273_v6 = vmul.f32 %v260_v25, %v528_v7 }
  0x40   : > { %v274_v14 = vmul.f32 %v270_v26, %v530_v8 }
  0x80   : > { %v292_v31 = vpop.permute.xlu1 %291  ;;  %v282_v32 = vpop.permute.xlu0 %281 }
  0x81   : > { %v303_v33 = vmul.f32 %v292_v31, %v275_v27  ;;  %v304_v34 = vmul.f32 %v292_v31, %v276_v28  ;;  %v299_v35 = vmul.f32 %v282_v32, %v271_v29  ;;  %v300_v36 = vmul.f32 %v282_v32, %v272_v30 }
  0x83   : > { %311 = vst [vmem:[%s181_s27 + $0x20] sm:$0xff] %v303_v33 }
  0x84   : > { %312 = vst [vmem:[%s181_s27 + $0x28] sm:$0xff] %v304_v34 }
  0x85   : > { %307 = vst [vmem:[%s181_s27] sm:$0xff] %v299_v35 }
  0x86   : > { %308 = vst [vmem:[%s181_s27 + $0x8] sm:$0xff] %v300_v36 }
  0x88   : > { %v297_v37 = vpop.permute.xlu1 %296  ;;  %v287_v38 = vpop.permute.xlu0 %286 }
  0x89   : > { %v305_v39 = vmul.f32 %v297_v37, %v277_v13  ;;  %v306_v40 = vmul.f32 %v297_v37, %v278_v5  ;;  %v301_v41 = vmul.f32 %v287_v38, %v273_v6  ;;  %v302_v42 = vmul.f32 %v287_v38, %v274_v14 }
  0x8b   : > { %313 = vst [vmem:[%s181_s27 + $0x30] sm:$0xff] %v305_v39 }
  0x8c   : > { %314 = vst [vmem:[%s181_s27 + $0x38] sm:$0xff] %v306_v40 }
  0x8d   : > { %309 = vst [vmem:[%s181_s27 + $0x10] sm:$0xff] %v301_v41 }
  0x8e   : > { %310 = vst [vmem:[%s181_s27 + $0x18] sm:$0xff] %v302_v42 }
  0x8f PF: > { %s12_s11 = sadd.s32 1, %s468_s11   ;;  %s589_s9 = smov %s464_s10 }
  0x90   : > { %p9_p5 = scmp.ge.s32.totalorder %s12_s11, 4   ;;  %s590_s10 = smov %s592_s12 }
  0x92   :  { %11 = sbr.rel (!%p9_p5) target bundleno = 2 (0x2), region = 58 }

</bundles_post_ra>
